<compile_context>
chip_gen: v7x
topology: tpu7x:2x2x1
jax: 0.10.0
libtpu: 0.0.40
codegen_flags: <defaults>
</compile_context>

<pallas_src>
import functools

import numpy as np
import jax
import jax.numpy as jnp
from jax.experimental import pallas as pl
from jax.experimental.pallas import tpu as pltpu


def _round_up(v, m):
    return ((v + m - 1) // m) * m


def _softplus(x):
    # Numerically stable softplus built from ops that lower cleanly in Mosaic
    # (max / abs / exp / log).  Used identically in-kernel and in the reference.
    return jnp.maximum(x, 0.0) + jnp.log(1.0 + jnp.exp(-jnp.abs(x)))


# ----------------------------- Pallas kernel ------------------------------

def _gmm_fused_kernel(x_ref, w0_ref, b0_ref, w1_ref, b1_ref, wh_ref, bh_ref,
                      dmask_ref, out_ref, *, n_components, diag_shift,
                      minimal_std):
    """Both trunks fused layer-wise; one lane-dense output slab.

    out lanes: [0,K) log_gates | [K, K+K*dim) means | chol entries (diag
    already softplus-transformed) | zero padding.
    """
    # bf16 MXU inputs, f32 accumulation; elementwise math stays f32.
    xb = x_ref[...].astype(jnp.bfloat16)

    h = jnp.dot(xb, w0_ref[...], preferred_element_type=jnp.float32)
    h = jnp.maximum(h + b0_ref[...], 0.0)

    h = jnp.dot(h.astype(jnp.bfloat16), w1_ref[...],
                preferred_element_type=jnp.float32)
    h = jnp.maximum(h + b1_ref[...], 0.0)

    out = (jnp.dot(h.astype(jnp.bfloat16), wh_ref[...],
                   preferred_element_type=jnp.float32) + bh_ref[...])

    # masked log_softmax over the first n_components lanes (f32, VPU/EUP/XLU)
    lane = jax.lax.broadcasted_iota(jnp.int32, out.shape, 1)
    is_gate = lane < n_components
    masked = jnp.where(is_gate, out, jnp.float32(-1e30))
    m = jnp.max(masked, axis=-1, keepdims=True)
    z = masked - m
    e = jnp.where(is_gate, jnp.exp(z), 0.0)
    lse = jnp.log(jnp.sum(e, axis=-1, keepdims=True))
    log_gates = z - lse

    # Cholesky-diagonal transform in-kernel: softplus(v + shift) + minimal_std
    # on the statically-known diagonal lanes (dmask is 1.0 there, 0.0 elsewhere).
    sp = _softplus(out + diag_shift) + minimal_std
    heads = out + dmask_ref[...] * (sp - out)      # exact passthrough elsewhere

    out_ref[...] = jnp.where(is_gate, log_gates, heads)   # one 128-wide vst


# ------------------------------ JAX glue -----------------------------------

def _tril_index_map(dim):
    rows, cols = np.tril_indices(dim)
    idx = np.zeros((dim, dim), dtype=np.int32)
    idx[rows, cols] = np.arange(rows.shape[0])
    return idx


def _unflatten_tril(flat, dim):
    """Gather-only (..., chol_dim) -> (..., dim, dim) lower-tri placement."""
    idx = _tril_index_map(dim)
    g = jnp.take(flat, jnp.asarray(idx.reshape(-1)), axis=-1)
    g = g.reshape(flat.shape[:-1] + (dim, dim))
    tril_mask = jnp.asarray(np.tril(np.ones((dim, dim), dtype=bool)))
    return jnp.where(tril_mask, g, 0.0)


def fill_triangular_gmm(flat_chols, n_components, dim,
                        init_std=1.0, minimal_std=1e-3):
    """Reference helper: tril placement + softplus(+shift)+minimal_std diagonal.

    TODO(synk): the exact fill_triangular_gmm helper is not given in the
    reference module; this assumes row-major lower-tri packing of the flat
    vector and a softplus diagonal such that z=0 gives std=init_std.
    """
    g = _unflatten_tril(flat_chols, dim)
    diag_mask = jnp.asarray(np.eye(dim, dtype=bool))
    shift = float(np.log(np.expm1(init_std - minimal_std)))
    return jnp.where(diag_mask, _softplus(g + shift) + minimal_std, g)


def _diag_lane_mask(n_components, dim, out_p):
    """1.0 on the output lanes that carry Cholesky-diagonal entries."""
    chol_dim = dim * (dim + 1) // 2
    chol_start = n_components * (1 + dim)      # after gates + means
    m = np.zeros((1, out_p), np.float32)
    for c in range(n_components):
        for r in range(dim):
            m[0, chol_start + c * chol_dim + r * (r + 1) // 2 + r] = 1.0
    return m


def _pick_tb(B):
    """Batch tile: >=2 grid steps for larger batches (v7x dual-TC + pipelining),
    multiple of 8 sublanes, capped at 1024 rows."""
    if B <= 8:
        return B
    tb = _round_up(pl.cdiv(B, 4), 8)
    return int(max(8, min(1024, tb)))


def conditional_gmm2_forward(x, params, n_components, dim,
                             init_std=1.0, minimal_std=1e-3):
    """x: (B, context_dim) -> (log_gates, means, chols)."""
    W0, b0, W1, b1, WH, bh = params
    B, C = x.shape
    Wt = W1.shape[0]                       # fused hidden width (Hg_p + Hc_p)
    OUT_P = WH.shape[1]                    # padded output width (multiple of 128)
    K = n_components
    chol_dim = dim * (dim + 1) // 2
    head_width = K * (dim + chol_dim)

    TB = _pick_tb(B)
    grid = (pl.cdiv(B, TB),)

    diag_mask = jnp.asarray(_diag_lane_mask(K, dim, OUT_P))
    diag_shift = float(np.log(np.expm1(init_std - minimal_std)))

    x_spec = pl.BlockSpec((TB, C), lambda i: (i, 0))
    # Constant block index -> weights DMA'd once, stay resident in VMEM.
    consts = (W0, b0, W1, b1, WH, bh, diag_mask)
    w_specs = [pl.BlockSpec(w.shape, lambda i: (0, 0)) for w in consts]
    out_spec = pl.BlockSpec((TB, OUT_P), lambda i: (i, 0))

    weight_bytes = sum(int(w.size) * w.dtype.itemsize for w in consts)
    act_bytes = 4 * TB * (C + 2 * Wt + OUT_P)
    flops = 2 * B * (C * Wt + Wt * Wt + Wt * OUT_P)
    cost = pl.CostEstimate(
        flops=int(flops),
        transcendentals=int(B * (K + K * dim + 2)),
        bytes_accessed=int(4 * x.size + weight_bytes + 4 * B * OUT_P))

    # Right-sized VMEM request (well under v7x's 64 MiB physical VMEM).
    vmem_limit = int(min(48 * 1024 * 1024,
                         max(16 * 1024 * 1024,
                             2 * weight_bytes + 6 * act_bytes)))

    out = pl.pallas_call(
        functools.partial(_gmm_fused_kernel, n_components=K,
                          diag_shift=diag_shift, minimal_std=minimal_std),
        out_shape=jax.ShapeDtypeStruct((B, OUT_P), jnp.float32),
        grid=grid,
        in_specs=[x_spec] + w_specs,
        out_specs=out_spec,
        compiler_params=pltpu.CompilerParams(
            dimension_semantics=("parallel",),
            vmem_limit_bytes=vmem_limit),
        cost_estimate=cost,
    )(x, *consts)

    log_gates = out[:, :K]
    means = out[:, K:K + K * dim].reshape(B, K, dim)
    chols_flat = out[:, K * (1 + dim):K * (1 + dim) + K * chol_dim].reshape(
        B, K, chol_dim)
    # Diagonal softplus already applied in-kernel -> gather/reshape only.
    chols = _unflatten_tril(chols_flat, dim)
    return log_gates, means, chols


# -------------------------- parameter creation -----------------------------

def _linear_init(key, fan_in, fan_out, zero_bias=False):
    """PyTorch nn.Linear default init: U(-1/sqrt(fan_in), 1/sqrt(fan_in))."""
    kw, kb = jax.random.split(key)
    bound = 1.0 / float(fan_in) ** 0.5
    w = jax.random.uniform(kw, (fan_in, fan_out), jnp.float32, -bound, bound)
    if zero_bias:
        b = jnp.zeros((1, fan_out), jnp.float32)
    else:
        b = jax.random.uniform(kb, (1, fan_out), jnp.float32, -bound, bound)
    return w, b


def _pad2(a, rows, cols):
    return jnp.pad(a, ((0, rows - a.shape[0]), (0, cols - a.shape[1])))


def make_raw_params(key, context_dim, n_components, dim, Hg, Hc):
    """Unfused per-layer weights, mirroring the PyTorch module structure."""
    mean_dim = dim
    chol_dim = dim * (dim + 1) // 2
    keys = jax.random.split(key, 7)
    # GateNN: Linear(ctx,Hg) -> ReLU -> Linear(Hg,Hg) -> ReLU -> Linear(Hg,K)
    gw0, gb0 = _linear_init(keys[0], context_dim, Hg)
    gw1, gb1 = _linear_init(keys[1], Hg, Hg)
    gwh, gbh = _linear_init(keys[2], Hg, n_components)
    # GaussianNN2: Linear(ctx,Hc) -> ReLU -> Linear(Hc,Hc) -> ReLU
    #   -> fc_mean (bias = init_bias_mean = zeros) and fc_chol
    cw0, cb0 = _linear_init(keys[3], context_dim, Hc)
    cw1, cb1 = _linear_init(keys[4], Hc, Hc)
    cwm, cbm = _linear_init(keys[5], Hc, n_components * mean_dim, zero_bias=True)
    cwc, cbc = _linear_init(keys[6], Hc, n_components * chol_dim)
    return (gw0, gb0, gw1, gb1, gwh, gbh,
            cw0, cb0, cw1, cb1, cwm, cbm, cwc, cbc)


def fuse_and_pad_params(raw, context_dim, n_components, dim):
    """Fuse both trunks layer-wise (concat / block-diag / packed heads), pad to
    lane-aligned widths, cast matmul weights to bf16 (biases stay f32)."""
    (gw0, gb0, gw1, gb1, gwh, gbh,
     cw0, cb0, cw1, cb1, cwm, cbm, cwc, cbc) = raw
    Hg, Hc = gw1.shape[0], cw1.shape[0]
    Hg_p, Hc_p = _round_up(Hg, 128), _round_up(Hc, 128)
    Wt = Hg_p + Hc_p
    K = n_components
    chol_dim = dim * (dim + 1) // 2
    head_width = K * (dim + chol_dim)
    OUT_P = _round_up(K + head_width, 128)

    # Layer 0: both trunks share x -> one (C, Wt) matmul.
    W0 = jnp.concatenate([_pad2(gw0, context_dim, Hg_p),
                          _pad2(cw0, context_dim, Hc_p)], axis=1)
    b0 = jnp.concatenate([_pad2(gb0, 1, Hg_p), _pad2(cb0, 1, Hc_p)], axis=1)

    # Layer 1: block-diagonal (Wt, Wt); cross blocks are exact zeros.
    W1 = jnp.zeros((Wt, Wt), jnp.float32)
    W1 = W1.at[:Hg, :Hg].set(gw1)
    W1 = W1.at[Hg_p:Hg_p + Hc, Hg_p:Hg_p + Hc].set(cw1)
    b1 = jnp.concatenate([_pad2(gb1, 1, Hg_p), _pad2(cb1, 1, Hc_p)], axis=1)

    # Heads packed into one (Wt, OUT_P) matrix whose columns are the final
    # output lanes: [0,K) gate logits | [K,K+K*dim) means | chol entries.
    WH = jnp.zeros((Wt, OUT_P), jnp.float32)
    WH = WH.at[:Hg, :K].set(gwh)
    WH = WH.at[Hg_p:Hg_p + Hc, K:K + K * dim].set(cwm)
    WH = WH.at[Hg_p:Hg_p + Hc, K + K * dim:K + head_width].set(cwc)
    bh = jnp.zeros((1, OUT_P), jnp.float32)
    bh = bh.at[:, :K].set(gbh)
    bh = bh.at[:, K:K + K * dim].set(cbm)
    bh = bh.at[:, K + K * dim:K + head_width].set(cbc)

    return (W0.astype(jnp.bfloat16), b0,
            W1.astype(jnp.bfloat16), b1,
            WH.astype(jnp.bfloat16), bh)


# --------------------------- pure-JAX reference -----------------------------

def _reference_forward(x, raw, n_components, dim):
    """Straightforward two-network computation on the RAW (unfused, unpadded)
    weights, with bf16 matmul inputs / f32 accumulation to match the kernel's
    MXU precision.  Validates both the kernel and the fuse/pad transform."""
    (gw0, gb0, gw1, gb1, gwh, gbh,
     cw0, cb0, cw1, cb1, cwm, cbm, cwc, cbc) = raw

    def dotbf(a, w):
        return jnp.dot(a.astype(jnp.bfloat16), w.astype(jnp.bfloat16),
                       preferred_element_type=jnp.float32)

    h = jnp.maximum(dotbf(x, gw0) + gb0, 0.0)
    h = jnp.maximum(dotbf(h, gw1) + gb1, 0.0)
    logits = dotbf(h, gwh) + gbh
    log_gates = jax.nn.log_softmax(logits, axis=-1)

    h = jnp.maximum(dotbf(x, cw0) + cb0, 0.0)
    h = jnp.maximum(dotbf(h, cw1) + cb1, 0.0)
    means = (dotbf(h, cwm) + cbm).reshape(-1, n_components, dim)
    chol_dim = dim * (dim + 1) // 2
    chols_flat = (dotbf(h, cwc) + cbc).reshape(-1, n_components, chol_dim)
    chols = fill_triangular_gmm(chols_flat, n_components, dim, init_std=1.0)
    return log_gates, means, chols


# --------------------------------- main ------------------------------------

if __name__ == "__main__":
    batch = 8
    context_dim = 8
    n_components = 4
    dim = 2
    num_neuron_gate_layer = 32
    num_neuron_component_layer = 32

    key = jax.random.PRNGKey(0)
    kx, kp = jax.random.split(key)
    x = jax.random.normal(kx, (batch, context_dim), jnp.float32)

    raw_params = make_raw_params(kp, context_dim, n_components, dim,
                                 num_neuron_gate_layer,
                                 num_neuron_component_layer)
    params = fuse_and_pad_params(raw_params, context_dim, n_components, dim)

    fwd = jax.jit(functools.partial(conditional_gmm2_forward,
                                    n_components=n_components, dim=dim))
    log_gates, means, chols = fwd(x, params)
    jax.block_until_ready((log_gates, means, chols))

    assert log_gates.shape == (batch, n_components)
    assert means.shape == (batch, n_components, dim)
    assert chols.shape == (batch, n_components, dim, dim)
    # log_softmax sanity: rows sum to 1 in prob space.
    assert jnp.allclose(jnp.sum(jnp.exp(log_gates), axis=-1), 1.0, atol=1e-5)

    # Numerical check against a pure-JAX reference on the raw (unfused) weights.
    ref_lg, ref_means, ref_chols = _reference_forward(x, raw_params,
                                                      n_components, dim)
    assert jnp.allclose(log_gates, ref_lg, atol=2e-3, rtol=2e-3)
    assert jnp.allclose(means, ref_means, atol=2e-3, rtol=2e-3)
    assert jnp.allclose(chols, ref_chols, atol=2e-3, rtol=2e-3)

    print("KERNEL_OK")
</pallas_src>

<mosaic_0001>
module attributes {stable_mosaic.version = 11 : i64} {
  func.func @_gmm_fused_kernel(%arg0: i32, %arg1: memref<8x8xf32, #tpu.memory_space<vmem>>, %arg2: memref<8x256xbf16, #tpu.memory_space<vmem>>, %arg3: memref<1x256xf32, #tpu.memory_space<vmem>>, %arg4: memref<256x256xbf16, #tpu.memory_space<vmem>>, %arg5: memref<1x256xf32, #tpu.memory_space<vmem>>, %arg6: memref<256x128xbf16, #tpu.memory_space<vmem>>, %arg7: memref<1x128xf32, #tpu.memory_space<vmem>>, %arg8: memref<1x128xf32, #tpu.memory_space<vmem>>, %arg9: memref<8x128xf32, #tpu.memory_space<vmem>>) attributes {dimension_semantics = [#tpu.dimension_semantics<parallel>], iteration_bounds = array<i64: 1>, scalar_prefetch = 0 : i64, scratch_operands = 0 : i64, tpu.core_type = #tpu.core_type<tc>, window_params = [{transform_indices = @transform_0, window_bounds = array<i64: 8, 8>}, {pipeline_mode = #tpu.pipeline_mode<synchronous>, transform_indices = @transform_1, window_bounds = array<i64: 8, 256>}, {pipeline_mode = #tpu.pipeline_mode<synchronous>, transform_indices = @transform_2, window_bounds = array<i64: 1, 256>}, {pipeline_mode = #tpu.pipeline_mode<synchronous>, transform_indices = @transform_3, window_bounds = array<i64: 256, 256>}, {pipeline_mode = #tpu.pipeline_mode<synchronous>, transform_indices = @transform_4, window_bounds = array<i64: 1, 256>}, {pipeline_mode = #tpu.pipeline_mode<synchronous>, transform_indices = @transform_5, window_bounds = array<i64: 256, 128>}, {pipeline_mode = #tpu.pipeline_mode<synchronous>, transform_indices = @transform_6, window_bounds = array<i64: 1, 128>}, {pipeline_mode = #tpu.pipeline_mode<synchronous>, transform_indices = @transform_7, window_bounds = array<i64: 1, 128>}, {transform_indices = @transform_8, window_bounds = array<i64: 8, 128>}]} {
    %c0 = arith.constant 0 : index
    %c0_0 = arith.constant 0 : index
    %0 = vector.load %arg1[%c0, %c0_0] : memref<8x8xf32, #tpu.memory_space<vmem>>, vector<8x8xf32>
    %1 = arith.truncf %0 : vector<8x8xf32> to vector<8x8xbf16>
    %c0_1 = arith.constant 0 : index
    %c0_2 = arith.constant 0 : index
    %2 = vector.load %arg2[%c0_1, %c0_2] : memref<8x256xbf16, #tpu.memory_space<vmem>>, vector<8x256xbf16>
    %cst = arith.constant dense<0.000000e+00> : vector<8x256xf32>
    %3 = tpu.matmul %1, %2, %cst {dimension_numbers = #tpu.dot_dimension_numbers<[1], [0], [0], [1], [0, 0, 1, 1], [], []>} : vector<8x8xbf16>, vector<8x256xbf16>, vector<8x256xf32> -> vector<8x256xf32>
    %c0_3 = arith.constant 0 : index
    %c0_4 = arith.constant 0 : index
    %4 = vector.load %arg3[%c0_3, %c0_4] : memref<1x256xf32, #tpu.memory_space<vmem>>, vector<1x256xf32>
    %5 = vector.broadcast %4 : vector<1x256xf32> to vector<8x256xf32>
    %6 = arith.addf %3, %5 : vector<8x256xf32>
    %cst_5 = arith.constant 0.000000e+00 : f32
    %7 = vector.broadcast %cst_5 : f32 to vector<8x256xf32>
    %8 = arith.maximumf %6, %7 : vector<8x256xf32>
    %9 = arith.truncf %8 : vector<8x256xf32> to vector<8x256xbf16>
    %c0_6 = arith.constant 0 : index
    %c0_7 = arith.constant 0 : index
    %10 = vector.load %arg4[%c0_6, %c0_7] : memref<256x256xbf16, #tpu.memory_space<vmem>>, vector<256x256xbf16>
    %cst_8 = arith.constant dense<0.000000e+00> : vector<8x256xf32>
    %11 = tpu.matmul %9, %10, %cst_8 {dimension_numbers = #tpu.dot_dimension_numbers<[1], [0], [0], [1], [0, 0, 1, 1], [], []>} : vector<8x256xbf16>, vector<256x256xbf16>, vector<8x256xf32> -> vector<8x256xf32>
    %c0_9 = arith.constant 0 : index
    %c0_10 = arith.constant 0 : index
    %12 = vector.load %arg5[%c0_9, %c0_10] : memref<1x256xf32, #tpu.memory_space<vmem>>, vector<1x256xf32>
    %13 = vector.broadcast %12 : vector<1x256xf32> to vector<8x256xf32>
    %14 = arith.addf %11, %13 : vector<8x256xf32>
    %cst_11 = arith.constant 0.000000e+00 : f32
    %15 = vector.broadcast %cst_11 : f32 to vector<8x256xf32>
    %16 = arith.maximumf %14, %15 : vector<8x256xf32>
    %17 = arith.truncf %16 : vector<8x256xf32> to vector<8x256xbf16>
    %c0_12 = arith.constant 0 : index
    %c0_13 = arith.constant 0 : index
    %18 = vector.load %arg6[%c0_12, %c0_13] : memref<256x128xbf16, #tpu.memory_space<vmem>>, vector<256x128xbf16>
    %cst_14 = arith.constant dense<0.000000e+00> : vector<8x128xf32>
    %19 = tpu.matmul %17, %18, %cst_14 {dimension_numbers = #tpu.dot_dimension_numbers<[1], [0], [0], [1], [0, 0, 1, 1], [], []>} : vector<8x256xbf16>, vector<256x128xbf16>, vector<8x128xf32> -> vector<8x128xf32>
    %c0_15 = arith.constant 0 : index
    %c0_16 = arith.constant 0 : index
    %20 = vector.load %arg7[%c0_15, %c0_16] : memref<1x128xf32, #tpu.memory_space<vmem>>, vector<1x128xf32>
    %21 = vector.broadcast %20 : vector<1x128xf32> to vector<8x128xf32>
    %22 = arith.addf %19, %21 : vector<8x128xf32>
    %23 = tpu.iota {dimensions = array<i32: 1>} : vector<8x128xi32>
    %c4_i32 = arith.constant 4 : i32
    %24 = vector.broadcast %c4_i32 : i32 to vector<8x128xi32>
    %25 = arith.cmpi slt, %23, %24 : vector<8x128xi32>
    %cst_17 = arith.constant -1.000000e+30 : f32
    %26 = vector.broadcast %cst_17 : f32 to vector<8x128xf32>
    %27 = arith.select %25, %22, %26 : vector<8x128xi1>, vector<8x128xf32>
    %cst_18 = arith.constant dense<0xFF800000> : vector<8xf32>
    %28 = vector.multi_reduction <maximumf>, %27, %cst_18 [1] : vector<8x128xf32> to vector<8xf32>
    %29 = vector.shape_cast %28 : vector<8xf32> to vector<8x1xf32>
    %30 = vector.broadcast %29 : vector<8x1xf32> to vector<8x128xf32>
    %31 = arith.subf %27, %30 : vector<8x128xf32>
    %32 = math.exp %31 : vector<8x128xf32>
    %cst_19 = arith.constant 0.000000e+00 : f32
    %33 = vector.broadcast %cst_19 : f32 to vector<8x128xf32>
    %34 = arith.select %25, %32, %33 : vector<8x128xi1>, vector<8x128xf32>
    %cst_20 = arith.constant dense<0.000000e+00> : vector<8xf32>
    %35 = vector.multi_reduction <add>, %34, %cst_20 [1] : vector<8x128xf32> to vector<8xf32>
    %36 = vector.shape_cast %35 : vector<8xf32> to vector<8x1xf32>
    %37 = math.log %36 : vector<8x1xf32>
    %38 = vector.broadcast %37 : vector<8x1xf32> to vector<8x128xf32>
    %39 = arith.subf %31, %38 : vector<8x128xf32>
    %cst_21 = arith.constant 0.53974241 : f32
    %40 = vector.broadcast %cst_21 : f32 to vector<8x128xf32>
    %41 = arith.addf %22, %40 : vector<8x128xf32>
    %cst_22 = arith.constant 0.000000e+00 : f32
    %42 = vector.broadcast %cst_22 : f32 to vector<8x128xf32>
    %43 = arith.maximumf %41, %42 : vector<8x128xf32>
    %44 = math.absf %41 : vector<8x128xf32>
    %cst_23 = arith.constant 0.000000e+00 : f32
    %45 = vector.broadcast %cst_23 : f32 to vector<8x128xf32>
    %46 = arith.subf %45, %44 : vector<8x128xf32>
    %47 = math.exp %46 : vector<8x128xf32>
    %cst_24 = arith.constant 1.000000e+00 : f32
    %48 = vector.broadcast %cst_24 : f32 to vector<8x128xf32>
    %49 = arith.addf %48, %47 : vector<8x128xf32>
    %50 = math.log %49 : vector<8x128xf32>
    %51 = arith.addf %43, %50 : vector<8x128xf32>
    %cst_25 = arith.constant 1.000000e-03 : f32
    %52 = vector.broadcast %cst_25 : f32 to vector<8x128xf32>
    %53 = arith.addf %51, %52 : vector<8x128xf32>
    %c0_26 = arith.constant 0 : index
    %c0_27 = arith.constant 0 : index
    %54 = vector.load %arg8[%c0_26, %c0_27] : memref<1x128xf32, #tpu.memory_space<vmem>>, vector<1x128xf32>
    %55 = arith.subf %53, %22 : vector<8x128xf32>
    %56 = vector.broadcast %54 : vector<1x128xf32> to vector<8x128xf32>
    %57 = arith.mulf %56, %55 : vector<8x128xf32>
    %58 = arith.addf %22, %57 : vector<8x128xf32>
    %59 = arith.select %25, %39, %58 : vector<8x128xi1>, vector<8x128xf32>
    %c0_28 = arith.constant 0 : index
    %c0_29 = arith.constant 0 : index
    %60 = vector.load %arg9[%c0_28, %c0_29] : memref<8x128xf32, #tpu.memory_space<vmem>>, vector<8x128xf32>
    tpu.vector_store %arg9[%c0_28, %c0_29], %59 {strides = array<i32>} : memref<8x128xf32, #tpu.memory_space<vmem>>, vector<8x128xf32>,
    return
  }
  func.func @transform_0(%arg0: i32) -> (i32, i32) {
    %c0_i32 = arith.constant 0 : i32
    %c0_i32_0 = arith.constant 0 : i32
    return %arg0, %c0_i32 : i32, i32
  }
  func.func @transform_1(%arg0: i32) -> (i32, i32) {
    %c0_i32 = arith.constant 0 : i32
    %c0_i32_0 = arith.constant 0 : i32
    %c0_i32_1 = arith.constant 0 : i32
    return %c0_i32, %c0_i32_0 : i32, i32
  }
  func.func @transform_2(%arg0: i32) -> (i32, i32) {
    %c0_i32 = arith.constant 0 : i32
    %c0_i32_0 = arith.constant 0 : i32
    %c0_i32_1 = arith.constant 0 : i32
    return %c0_i32, %c0_i32_0 : i32, i32
  }
  func.func @transform_3(%arg0: i32) -> (i32, i32) {
    %c0_i32 = arith.constant 0 : i32
    %c0_i32_0 = arith.constant 0 : i32
    %c0_i32_1 = arith.constant 0 : i32
    return %c0_i32, %c0_i32_0 : i32, i32
  }
  func.func @transform_4(%arg0: i32) -> (i32, i32) {
    %c0_i32 = arith.constant 0 : i32
    %c0_i32_0 = arith.constant 0 : i32
    %c0_i32_1 = arith.constant 0 : i32
    return %c0_i32, %c0_i32_0 : i32, i32
  }
  func.func @transform_5(%arg0: i32) -> (i32, i32) {
    %c0_i32 = arith.constant 0 : i32
    %c0_i32_0 = arith.constant 0 : i32
    %c0_i32_1 = arith.constant 0 : i32
    return %c0_i32, %c0_i32_0 : i32, i32
  }
  func.func @transform_6(%arg0: i32) -> (i32, i32) {
    %c0_i32 = arith.constant 0 : i32
    %c0_i32_0 = arith.constant 0 : i32
    %c0_i32_1 = arith.constant 0 : i32
    return %c0_i32, %c0_i32_0 : i32, i32
  }
  func.func @transform_7(%arg0: i32) -> (i32, i32) {
    %c0_i32 = arith.constant 0 : i32
    %c0_i32_0 = arith.constant 0 : i32
    %c0_i32_1 = arith.constant 0 : i32
    return %c0_i32, %c0_i32_0 : i32, i32
  }
  func.func @transform_8(%arg0: i32) -> (i32, i32) {
    %c0_i32 = arith.constant 0 : i32
    %c0_i32_0 = arith.constant 0 : i32
    return %arg0, %c0_i32 : i32, i32
  }
}

</mosaic_0001>

<bundles_post_ra>
// kernel: conditional_gmm2_forward.1
= control target key start
LH: loop header
LB: loop body
LE: loop exit
PB: predicated region body
PF: predicated region fallthrough
CT: control target
= control target key end

     0   :  { %13 = vsyncpa [#allocation3], 0  ;;  %s951_s0 = inlined_call_operand.hbm [shape: f32[8,8], index: 0, kind: input, shape index: {}]   ;;  %s952_s1 = inlined_call_operand.vmem [shape: bf16[8,256], index: 1, kind: input, shape index: {}]   ;;  %s953_s2 = inlined_call_operand.vmem [shape: f32[1,256], index: 2, kind: input, shape index: {}]   ;;  %s954_s3 = inlined_call_operand.hbm [shape: bf16[256,256], index: 3, kind: input, shape index: {}]   ;;  %s955_s4 = inlined_call_operand.vmem [shape: f32[1,256], index: 4, kind: input, shape index: {}]   ;;  %s956_s5 = inlined_call_operand.hbm [shape: bf16[256,128], index: 5, kind: input, shape index: {}]   ;;  %s957_s6 = inlined_call_operand.vmem [shape: f32[1,128], index: 6, kind: input, shape index: {}]   ;;  %s958_s7 = inlined_call_operand.vmem [shape: f32[1,128], index: 7, kind: input, shape index: {}]   ;;  %s959_s8 = inlined_call_operand.vmem [shape: f32[8,128], index: 8, kind: output, shape index: {}]  }
   0x1   :  { %14 = vsyncpa [#allocation5], 0  ;;  %s841_s27 = smov [#allocation4]   ;;  %s771_s9 = scalar_lea.hbm %s954_s3, 4096 }
   0x2   :  { %s34_s28 = sshll.u32 %s841_s27, 4  ;;  %p772_p0 = scmp.ne.s32.totalorder %s954_s3, %s771_s9  ;;  %s35_s28 = int_to_ptr.vmem [resolvable:$true] %s34_s28 }
   0x3   :  { %p775_p1 = scmp.lt.u32.totalorder %s771_s9, %s954_s3 }
   0x5   :  { %p777_p2 = pnand %p775_p1, %p772_p0 }
   0x7   :  { %780 = shalt.err (!%p777_p2)
}
   0x8   :  { %s781_s14 = scalar_lea.vmem %s35_s28, 4096  ;;  %p786_p4 = scmp.lt.s32.totalorder %s35_s28, %s35_s28 }
   0x9   :  { %p782_p3 = scmp.ne.s32.totalorder %s35_s28, %s781_s14  ;;  %p787_p5 = scmp.lt.s32.totalorder %s781_s14, %s781_s14 }
   0xb   :  { %p788_p6 = por %p787_p5, %p786_p4 }
   0xd   :  { %p789_p7 = pnand %p788_p6, %p782_p3 }
   0xf   :  { %792 = shalt.err (!%p789_p7)
}
  0x10   :  { %s842_s15 = smov 128   ;;  %s843_s16 = smov 8  }
  0x11   :  { %40 = dma.hbm_to_vmem [thread:$0]  %s954_s3, 4096, %s35_s28, [#allocation5], %s842_s15, %s842_s15, %s843_s16  }
  0x12   :  { %s844_s19 = smov [#allocation2]   ;;  %s845_s21 = smov [#allocation6]  }
  0x13   :  { %s21_s20 = sshll.u32 %s844_s19, 4  ;;  %s48_s22 = sshll.u32 %s845_s21, 4  ;;  %s22_s20 = int_to_ptr.vmem [resolvable:$true] %s21_s20  ;;  %s49_s22 = int_to_ptr.vmem [resolvable:$true] %s48_s22 }
  0x14   :  { %s793_s25 = scalar_lea.hbm %s951_s0, 128 }
  0x15   :  { %p794_p8 = scmp.ne.s32.totalorder %s951_s0, %s793_s25  ;;  %p797_p9 = scmp.lt.u32.totalorder %s793_s25, %s951_s0 }
  0x17   :  { %p799_p10 = pnand %p797_p9, %p794_p8 }
  0x19   :  { %802 = shalt.err (!%p799_p10)
}
  0x1a   :  { %s803_s3 = scalar_lea.vmem %s22_s20, 128  ;;  %p808_p12 = scmp.lt.s32.totalorder %s22_s20, %s22_s20 }
  0x1b   :  { %p804_p11 = scmp.ne.s32.totalorder %s22_s20, %s803_s3  ;;  %p809_p13 = scmp.lt.s32.totalorder %s803_s3, %s803_s3 }
  0x1d   :  { %p810_p0 = por %p809_p13, %p808_p12 }
  0x1f   :  { %p811_p1 = pnand %p810_p0, %p804_p11 }
  0x21   :  { %814 = shalt.err (!%p811_p1)
}
  0x22   :  { %24 = dma.hbm_to_vmem [thread:$0]  %s951_s0, 128, %s22_s20, [#allocation3]  }
  0x23   :  { %s815_s12 = scalar_lea.hbm %s956_s5, 2048 }
  0x24   :  { %p816_p2 = scmp.ne.s32.totalorder %s956_s5, %s815_s12  ;;  %p819_p3 = scmp.lt.u32.totalorder %s815_s12, %s956_s5 }
  0x26   :  { %p821_p4 = pnand %p819_p3, %p816_p2 }
  0x28   :  { %824 = shalt.err (!%p821_p4)
}
  0x29   :  { %s825_s17 = scalar_lea.vmem %s49_s22, 2048  ;;  %p830_p6 = scmp.lt.s32.totalorder %s49_s22, %s49_s22 }
  0x2a   :  { %p826_p5 = scmp.ne.s32.totalorder %s49_s22, %s825_s17  ;;  %p831_p7 = scmp.lt.s32.totalorder %s825_s17, %s825_s17 }
  0x2c   :  { %p832_p8 = por %p831_p7, %p830_p6 }
  0x2e   :  { %p833_p9 = pnand %p832_p8, %p826_p5 }
  0x30   :  { %836 = shalt.err (!%p833_p9)
}
  0x31   :  { %s846_s0 = smov 64   ;;  %s847_s18 = smov 4  }
  0x32   :  { %54 = dma.hbm_to_vmem [thread:$0]  %s956_s5, 2048, %s49_s22, [#allocation5], %s846_s0, %s846_s0, %s847_s18  }
  0x33   :  { %837 = dma.done.wait [#allocation3], 128  }
  0x34   :  { %838 = vsyncadd [#allocation3], 4294967168 }
  0x35   :  { %839 = dma.done.wait [#allocation5], 6144  }
  0x36   :  { %840 = vsyncadd [#allocation5], 4294961152  ;;  %v848_v0 = vmov 0   ;;  %v71_v1 = vld [vmem:[%s952_s1] sm:$0xff]  ;;  %vm93_vm0 = vcmask 1043456   ;;  %v69_v2 = vld [vmem:[#allocation2] sm:$0xff]  ;;  %v74_v51 = vlaneseq }
  0x37   :  { %132 = vmatprep.mubr.bf16.mxu0 %v848_v0  ;;  %v614_v3 = vcombine.high %v71_v1, %v71_v1  ;;  %v613_v4 = vcombine.low %v71_v1, %v71_v1  ;;  %v699_v5 = vld [vmem:[#allocation4 + $0x4] ss:$8 sps:$4 sm:$0xff]   ;;  %v701_v6 = vld [vmem:[#allocation4] ss:$8 sps:$4 sm:$0xff]   ;;  %v702_v7 = vld [vmem:[#allocation4 + $0x14] ss:$8 sps:$4 sm:$0xff]   ;;  %v70_v9 = vpack.c.bf16 %v69_v2, %v69_v2 }
  0x38   :  { %349 = vmatprep.subr.bf16.mxu1 %v699_v5  ;;  %vm89_vm1 = vcmask 64512   ;;  %v704_v10 = vld [vmem:[#allocation4 + $0x10] ss:$8 sps:$4 sm:$0xff]   ;;  %v705_v11 = vld [vmem:[#allocation4 + $0x24] ss:$8 sps:$4 sm:$0xff]   ;;  %v75_v52 = vshrl.u32 %v74_v51, 7 }
  0x39   :  { %615 = vmatprep.subr.msk.bf16.mxu0 %vm93_vm0, %v614_v3  ;;  %v95_v8 = vsel %vm93_vm0, %v613_v4, 0  ;;  %350 = vmatpush1.bf16.msra.mxu1 %v701_v6  ;;  %v707_v12 = vld [vmem:[#allocation4 + $0x20] ss:$8 sps:$4 sm:$0xff]   ;;  %v708_v13 = vld [vmem:[#allocation4 + $0x34] ss:$8 sps:$4 sm:$0xff]  }
  0x3a   :  { %101 = vmatpush1.bf16.msra.mxu0 %v95_v8  ;;  %351 = vmatprep.subr.bf16.mxu1 %v702_v7  ;;  %v710_v14 = vld [vmem:[#allocation4 + $0x30] ss:$8 sps:$4 sm:$0xff]   ;;  %v711_v15 = vld [vmem:[#allocation4 + $0x44] ss:$8 sps:$4 sm:$0xff]   ;;  %v713_v16 = vld [vmem:[#allocation4 + $0x40] ss:$8 sps:$4 sm:$0xff]  }
  0x3b   :  { %v714_v17 = vld [vmem:[#allocation4 + $0x54] ss:$8 sps:$4 sm:$0xff]   ;;  %v716_v18 = vld [vmem:[#allocation4 + $0x50] ss:$8 sps:$4 sm:$0xff]   ;;  %v717_v19 = vld [vmem:[#allocation4 + $0x64] ss:$8 sps:$4 sm:$0xff]  }
  0x3c   :  { %v719_v20 = vld [vmem:[#allocation4 + $0x60] ss:$8 sps:$4 sm:$0xff]   ;;  %v720_v21 = vld [vmem:[#allocation4 + $0x74] ss:$8 sps:$4 sm:$0xff]   ;;  %v722_v22 = vld [vmem:[#allocation4 + $0x70] ss:$8 sps:$4 sm:$0xff]  }
  0x3d   :  { %616 = vmatmul.mubr.msk.bf16.vlgmr.msra.gmra.mrb[0].mxu0 %vm89_vm1, %v70_v9  ;;  %352 = vmatpush1.bf16.msra.mxu1 %v704_v10  ;;  %v723_v23 = vld [vmem:[#allocation4 + $0x84] ss:$8 sps:$4 sm:$0xff]   ;;  %v725_v24 = vld [vmem:[#allocation4 + $0x80] ss:$8 sps:$4 sm:$0xff]   ;;  %v726_v25 = vld [vmem:[#allocation4 + $0x94] ss:$8 sps:$4 sm:$0xff]  }
  0x3e   :  { %353 = vmatprep.subr.bf16.mxu1 %v705_v11  ;;  %v728_v26 = vld [vmem:[#allocation4 + $0x90] ss:$8 sps:$4 sm:$0xff]   ;;  %v729_v27 = vld [vmem:[#allocation4 + $0xa4] ss:$8 sps:$4 sm:$0xff]   ;;  %v731_v28 = vld [vmem:[#allocation4 + $0xa0] ss:$8 sps:$4 sm:$0xff]  }
  0x3f   :  { %v732_v29 = vld [vmem:[#allocation4 + $0xb4] ss:$8 sps:$4 sm:$0xff]   ;;  %v734_v30 = vld [vmem:[#allocation4 + $0xb0] ss:$8 sps:$4 sm:$0xff]   ;;  %v735_v31 = vld [vmem:[#allocation4 + $0xc4] ss:$8 sps:$4 sm:$0xff]  }
  0x40   :  { %v737_v32 = vld [vmem:[#allocation4 + $0xc0] ss:$8 sps:$4 sm:$0xff]   ;;  %v738_v33 = vld [vmem:[#allocation4 + $0xd4] ss:$8 sps:$4 sm:$0xff]   ;;  %v740_v34 = vld [vmem:[#allocation4 + $0xd0] ss:$8 sps:$4 sm:$0xff]  }
  0x41   :  { %354 = vmatpush1.bf16.msra.mxu1 %v707_v12  ;;  %v741_v35 = vld [vmem:[#allocation4 + $0xe4] ss:$8 sps:$4 sm:$0xff]   ;;  %v743_v36 = vld [vmem:[#allocation4 + $0xe0] ss:$8 sps:$4 sm:$0xff]   ;;  %v744_v37 = vld [vmem:[#allocation4 + $0xf4] ss:$8 sps:$4 sm:$0xff]  }
  0x42   :  { %355 = vmatprep.subr.bf16.mxu1 %v708_v13  ;;  %v746_v38 = vld [vmem:[#allocation4 + $0xf0] ss:$8 sps:$4 sm:$0xff]   ;;  %v747_v39 = vld [vmem:[#allocation6 + $0x40] sm:$0xff]   ;;  %v749_v41 = vld [vmem:[#allocation6 + $0x48] sm:$0xff]   ;;  %v76_v53 = vsub.s32 0, %v75_v52  ;;  %v80_v55 = vsub.s32 1, %v75_v52 }
  0x43   :  { %v748_v40 = vld [vmem:[#allocation6] sm:$0xff]   ;;  %667 = vmatprep.subr.bf16.mxu0 %v747_v39  ;;  %v750_v42 = vld [vmem:[#allocation6 + $0x8] sm:$0xff]   ;;  %v751_v43 = vld [vmem:[#allocation6 + $0x50] sm:$0xff]  }
  0x44   :  { %668 = vmatpush3.bf16.msra.mxu0 %v748_v40  ;;  %v752_v44 = vld [vmem:[#allocation6 + $0x10] sm:$0xff]   ;;  %v753_v45 = vld [vmem:[#allocation6 + $0x58] sm:$0xff]   ;;  %v755_v47 = vld [vmem:[#allocation6 + $0x60] sm:$0xff]  }
  0x45   :  { %356 = vmatpush1.bf16.msra.mxu1 %v710_v14  ;;  %669 = vmatprep.subr.bf16.mxu0 %v749_v41  ;;  %v754_v46 = vld [vmem:[#allocation6 + $0x18] sm:$0xff]   ;;  %v756_v48 = vld [vmem:[#allocation6 + $0x20] sm:$0xff]   ;;  %v757_v49 = vld [vmem:[#allocation6 + $0x68] sm:$0xff]  }
  0x46   :  { %357 = vmatprep.subr.bf16.mxu1 %v711_v15  ;;  %v758_v50 = vld [vmem:[#allocation6 + $0x28] sm:$0xff]   ;;  %v72_v54 = vld [vmem:[%s953_s2] sm:$0x3]  ;;  %v761_v6 = vld [vmem:[#allocation6 + $0x78] sm:$0xff]  }
  0x47   :  { %v77_v56 = vrot.slane %v72_v54, %v76_v53  ;;  %v81_v57 = vrot.slane %v72_v54, %v80_v55  ;;  %v759_v4 = vld [vmem:[#allocation6 + $0x70] sm:$0xff]   ;;  %v762_v7 = vld [vmem:[#allocation6 + $0x38] sm:$0xff]  }
  0x48   :  { %670 = vmatpush3.bf16.msra.mxu0 %v750_v42  ;;  %v760_v5 = vld [vmem:[#allocation6 + $0x30] sm:$0xff]  }
  0x49   :  { %358 = vmatpush1.bf16.msra.mxu1 %v713_v16  ;;  %671 = vmatprep.subr.bf16.mxu0 %v751_v43  ;;  %v177_v8 = vld [vmem:[%s955_s4] sm:$0x3] }
  0x4a   :  { %359 = vmatprep.subr.bf16.mxu1 %v714_v17  ;;  %v182_v9 = vrot.slane %v177_v8, %v76_v53  ;;  %v186_v10 = vrot.slane %v177_v8, %v80_v55 }
  0x4c   :  { %672 = vmatpush3.bf16.msra.mxu0 %v752_v44 }
  0x4d   :  { %360 = vmatpush1.bf16.msra.mxu1 %v716_v18  ;;  %673 = vmatprep.subr.bf16.mxu0 %v753_v45 }
  0x4e   :  { %361 = vmatprep.subr.bf16.mxu1 %v717_v19 }
  0x50   :  { %674 = vmatpush3.bf16.msra.mxu0 %v754_v46 }
  0x51   :  { %362 = vmatpush1.bf16.msra.mxu1 %v719_v20  ;;  %675 = vmatprep.subr.bf16.mxu0 %v755_v47 }
  0x52   :  { %363 = vmatprep.subr.bf16.mxu1 %v720_v21  ;;  %v570_v21 = vand.u32 127, %v74_v51 }
  0x54   :  { %676 = vmatpush3.bf16.msra.mxu0 %v756_v48  ;;  %vm571_vm2 = vcmp.lt.s32.totalorder %v570_v21, 4  ;;  %v666_v48 = vld [vmem:[%s958_s7] ss:$0 sm:$0xff] }
  0x55   :  { %364 = vmatpush1.bf16.msra.mxu1 %v722_v22  ;;  %677 = vmatprep.subr.bf16.mxu0 %v757_v49 }
  0x56   :  { %365 = vmatprep.subr.bf16.mxu1 %v723_v23  ;;  %v649_v23 = vld [vmem:[%s957_s6] ss:$0 sm:$0xff] }
  0x58   :  { %678 = vmatpush3.bf16.msra.mxu0 %v758_v50 }
  0x59   :  { %366 = vmatpush1.bf16.msra.mxu1 %v725_v24  ;;  %679 = vmatprep.subr.bf16.mxu0 %v759_v4 }
  0x5a   :  { %367 = vmatprep.subr.bf16.mxu1 %v726_v25 }
  0x5c   :  { %680 = vmatpush3.bf16.msra.mxu0 %v760_v5 }
  0x5d   :  { %368 = vmatpush1.bf16.msra.mxu1 %v728_v26  ;;  %681 = vmatprep.subr.bf16.mxu0 %v761_v6 }
  0x5e   :  { %369 = vmatprep.subr.bf16.mxu1 %v729_v27 }
  0x60   :  { %682 = vmatpush3.bf16.msra.mxu0 %v762_v7 }
  0x61   :  { %370 = vmatpush1.bf16.msra.mxu1 %v731_v28 }
  0x62   :  { %371 = vmatprep.subr.bf16.mxu1 %v732_v29 }
  0x65   :  { %372 = vmatpush1.bf16.msra.mxu1 %v734_v30 }
  0x66   :  { %373 = vmatprep.subr.bf16.mxu1 %v735_v31 }
  0x69   :  { %374 = vmatpush1.bf16.msra.mxu1 %v737_v32 }
  0x6a   :  { %375 = vmatprep.subr.bf16.mxu1 %v738_v33 }
  0x6d   :  { %376 = vmatpush1.bf16.msra.mxu1 %v740_v34 }
  0x6e   :  { %377 = vmatprep.subr.bf16.mxu1 %v741_v35 }
  0x71   :  { %378 = vmatpush1.bf16.msra.mxu1 %v743_v36 }
  0x72   :  { %379 = vmatprep.subr.bf16.mxu1 %v744_v37 }
  0x75   :  { %380 = vmatpush1.bf16.msra.mxu1 %v746_v38 }
 0x110   :  { %v134_v58 = vpop.f32.mrb[0].mxu0 }
 0x111   :  { %v135_v59 = vadd.f32 %v134_v58, %v77_v56  ;;  %v136_v60 = vpop.f32.mrb[1].mxu0 }
 0x112   :  { %v137_v61 = vadd.f32 %v136_v60, %v81_v57  ;;  %v138_v62 = vpop.f32.mrb[2].mxu0 }
 0x113   :  { %v141_v63 = vmax.f32 %v135_v59, 0.0  ;;  %v139_v0 = vpop.f32.mrb[3].mxu0 }
 0x114   :  { %v142_v1 = vmax.f32 %v137_v61, 0.0 }
 0x115   :  { %v143_v3 = vpack.c.bf16 %v141_v63, %v141_v63 }
 0x116   :  { %v144_v2 = vpack.c.bf16 %v142_v1, %v142_v1 }
 0x118   :  { %381 = vmatprep.mubr.bf16.mxu1 %v144_v2 }
 0x119   :  { %382 = vmatmul.mubr.bf16.vlgmr.msra.gmra.mrb[0].mxu1 %v143_v3 }
 0x1ec   :  { %v383_v11 = vpop.f32.mrb[0].mxu1 }
 0x1ed   :  { %v384_v12 = vadd.f32 %v383_v11, %v182_v9  ;;  %v385_v13 = vpop.f32.mrb[1].mxu1 }
 0x1ee   :  { %v386_v14 = vadd.f32 %v385_v13, %v186_v10  ;;  %v387_v15 = vpop.f32.mrb[2].mxu1 }
 0x1ef   :  { %v390_v16 = vmax.f32 %v384_v12, 0.0  ;;  %v388_v17 = vpop.f32.mrb[3].mxu1 }
 0x1f0   :  { %v391_v18 = vmax.f32 %v386_v14, 0.0 }
 0x1f1   :  { %v392_v20 = vpack.c.bf16 %v390_v16, %v390_v16 }
 0x1f2   :  { %v393_v19 = vpack.c.bf16 %v391_v18, %v391_v18 }
 0x1f4   :  { %561 = vmatprep.mubr.bf16.mxu0 %v393_v19 }
 0x1f5   :  { %562 = vmatmul.mubr.bf16.vlgmr.msra.gmra.mrb[4].mxu0 %v392_v20 }
 0x2c8   :  { %v683_v22 = vpop.f32.mrb[4].mxu0 }
 0x2c9   :  { %v684_v24 = vpop.f32.mrb[5].mxu0 }
 0x2ca   :  { %v685_v25 = vadd.f32 %v684_v24, %v683_v22  ;;  %v686_v26 = vpop.f32.mrb[6].mxu0 }
 0x2cb   :  { %v687_v27 = vpop.f32.mrb[7].mxu0 }
 0x2cc   :  { %v564_v28 = vadd.f32 %v685_v25, %v649_v23 }
 0x2ce   :  { %v572_v29 = vsel %vm571_vm2, %v564_v28, -1e+30  ;;  %v584_v35 = vadd.f32 0.5397424, %v564_v28 }
 0x2cf   :  { %573 = vmax.xlane.f32.xlu0 %v572_v29 }
 0x2d0   :  { %v586_v36 = vand.u32 2147483647, %v584_v35  ;;  %v585_v43 = vmax.f32 %v584_v35, 0.0 }
 0x2d2   :  { %v587_v37 = vsub.f32 0.0, %v586_v36 }
 0x2d4   :  { %v588_v38 = vmul.f32 1.442695, %v587_v37 }
 0x35c   :  { %v574_v30 = vpop.xlane.xlu0 %573 }
 0x35d   :  { %v575_v31 = vsub.f32 %v572_v29, %v574_v30 }
 0x35f   :  { %v576_v32 = vmul.f32 1.442695, %v575_v31 }
 0x361   :  { %763 = vpow2.f32 %v576_v32 }
 0x362   :  { %765 = vpow2.f32 %v588_v38 }
 0x36b   :  { %v764_v33 = vpop.eup %763 }
 0x36c   :  { %v578_v34 = vsel %vm571_vm2, %v764_v33, 0.0  ;;  %v766_v39 = vpop.eup %765 }
 0x36d   :  { %579 = vadd.xlane.f32.xlu0 %v578_v34  ;;  %v590_v40 = vadd.f32 1.0, %v766_v39 }
 0x36f   :  { %767 = vlog2.f32 %v590_v40 }
 0x379   :  { %v768_v41 = vpop.eup %767 }
 0x37a   :  { %v592_v42 = vmul.f32 0.6931472, %v768_v41 }
 0x37c   :  { %v593_v44 = vadd.f32 %v592_v42, %v585_v43 }
 0x37e   :  { %v594_v46 = vadd.f32 0.001, %v593_v44 }
 0x380   :  { %v596_v47 = vsub.f32 %v594_v46, %v564_v28 }
 0x382   :  { %v603_v49 = vmul.f32 %v666_v48, %v596_v47 }
 0x384   :  { %v604_v52 = vadd.f32 %v603_v49, %v564_v28 }
 0x3fa   :  { %v580_v45 = vpop.xlane.xlu0 %579 }
 0x3fb   :  { %769 = vlog2.f32 %v580_v45 }
 0x405   :  { %v770_v50 = vpop.eup %769 }
 0x406   :  { %v582_v51 = vmul.f32 0.6931472, %v770_v50 }
 0x408   :  { %v583_v53 = vsub.f32 %v575_v31, %v582_v51 }
 0x40a   :  { %v605_v54 = vsel %vm571_vm2, %v583_v53, %v604_v52 }
 0x40b   :  { %606 = vst [vmem:[%s959_s8] sm:$0xff] %v605_v54 }
 0x40c   :  { %611 = vsyncpa [#allocation3], 1 }
 0x40d   :  { %612 = vsyncpa [#allocation5], 1 }

</bundles_post_ra>
